<compile_context>
chip_gen: v7x
topology: tpu7x:2x2x1
jax: 0.10.0
libtpu: 0.0.40
codegen_flags: <defaults>
</compile_context>

<pallas_src>
import math

import jax
import jax.numpy as jnp
from jax import lax
from jax.experimental import pallas as pl
from jax.experimental.pallas import tpu as pltpu


# ----------------------------- Pallas kernel -------------------------------

def _make_kernel(fuse_delta: bool, has_bias: bool, multi_k: bool, compute_dtype):
    """Kernel factory. Ref order: [alpha], x, w, [dw], [bias], out, [acc]."""

    def kernel(*refs):
        idx = 0
        if fuse_delta:
            alpha_ref = refs[idx]; idx += 1
        x_ref = refs[idx]; idx += 1
        w_ref = refs[idx]; idx += 1
        if fuse_delta:
            dw_ref = refs[idx]; idx += 1
        if has_bias:
            b_ref = refs[idx]; idx += 1
        o_ref = refs[idx]; idx += 1
        acc_ref = refs[idx] if multi_k else None

        if multi_k:
            k = pl.program_id(2)

            @pl.when(k == 0)
            def _init():
                acc_ref[...] = jnp.zeros_like(acc_ref)

        # Effective weight tile. When fuse_delta is False the wrapper already
        # streams W_eff (or alpha == 0), so this is just a load (+ optional cast).
        if fuse_delta:
            w32 = (w_ref[...].astype(jnp.float32)
                   + alpha_ref[0, 0] * dw_ref[...].astype(jnp.float32))
            w_eff = w32.astype(compute_dtype)
        else:
            w_eff = w_ref[...].astype(compute_dtype)
        x_tile = x_ref[...].astype(compute_dtype)

        # x: (tm, tk), w_eff: (tn, tk). Contract the shared last (K) dim so the
        # (out, in)-layout weight feeds the MXU with no XLU transpose.
        partial = lax.dot_general(
            x_tile, w_eff,
            dimension_numbers=(((1,), (1,)), ((), ())),
            preferred_element_type=jnp.float32,
        )

        if multi_k:
            acc_ref[...] += partial

            @pl.when(k == pl.num_programs(2) - 1)
            def _finalize():
                out = acc_ref[...]
                if has_bias:
                    out = out + b_ref[...].astype(jnp.float32)
                o_ref[...] = out.astype(o_ref.dtype)
        else:
            # Single K step: skip the accumulator read-modify-write entirely.
            if has_bias:
                partial = partial + b_ref[...].astype(jnp.float32)
            o_ref[...] = partial.astype(o_ref.dtype)

    return kernel


# ------------------------------ tile helpers --------------------------------

def _round_up(x: int, m: int) -> int:
    return ((x + m - 1) // m) * m


def _sublane_align(dtype) -> int:
    """Min sublane tile: 8 for 32-bit, 16 for 16-bit, 32 for 8-bit dtypes."""
    return 32 // jnp.dtype(dtype).itemsize


def _choose_tile(dim: int, preferred: int, align: int) -> int:
    """Multiple of `align`, <= preferred (floored to align), <= aligned dim."""
    preferred = max(align, (preferred // align) * align)
    return min(preferred, _round_up(dim, align))


def _vmem_limit_bytes(tm, tn, tk, x_dt, w_dt, streams_delta, has_bias, b_dt,
                      out_dt, multi_k):
    bpe = lambda d: jnp.dtype(d).itemsize
    ws = 2 * tm * tk * bpe(x_dt)                  # x (double buffered)
    ws += 2 * tn * tk * bpe(w_dt)                 # W (or W_eff)
    if streams_delta:
        ws += 2 * tn * tk * bpe(w_dt)             # dW
    if has_bias:
        ws += 2 * tn * bpe(b_dt)
    ws += 2 * tm * tn * bpe(out_dt)               # output
    if multi_k:
        ws += tm * tn * 4                         # f32 accumulator scratch
    limit = int(ws * 1.5) + (4 << 20)             # headroom for compiler temps
    try:
        cap = getattr(pltpu.get_tpu_info(), "vmem_capacity_bytes", None)
    except Exception:
        cap = None
    ceiling = int(cap * 0.8) if cap else (48 << 20)  # stay inside v7x's 64 MiB
    return max(16 << 20, min(limit, ceiling))


# ------------------------------ JAX wrapper --------------------------------

def additive_linear(x, weight, delta_weight, bias=None, alpha=1.0,
                    tile_m=None, tile_n=None, tile_k=None,
                    mxu_input_dtype=None):
    """Pallas implementation of AdditiveLinear.forward.

    x:            (batch, in_features)
    weight:       (out_features, in_features)   (frozen)
    delta_weight: (out_features, in_features)
    bias:         (out_features,) or None
    alpha:        python float or scalar array
    mxu_input_dtype: optional narrower dtype (e.g. jnp.bfloat16) fed to the MXU
                     while keeping f32 accumulation.
    """
    M, K = x.shape
    N, K2 = weight.shape
    assert K == K2, "weight in_features must match x"

    out_dtype = x.dtype
    compute_dtype = (jnp.dtype(mxu_input_dtype) if mxu_input_dtype is not None
                     else jnp.dtype(x.dtype))

    # Static alpha == 0 -> drop the delta stream entirely.
    has_delta = not (isinstance(alpha, (int, float)) and float(alpha) == 0.0)
    has_bias = bias is not None

    # Dtype-aware alignment: tm is the x/output sublane dim; tn/tk are lane dims.
    align_m = _sublane_align(out_dtype)
    tm = _choose_tile(M, tile_m if tile_m is not None else 512, align_m)
    tn = _choose_tile(N, tile_n if tile_n is not None else 512, 128)
    tk = _choose_tile(K, tile_k if tile_k is not None else 1024, 128)

    # v7x has 2 TensorCores sharded over the parallel grid axes: if the (M, N)
    # grid collapses to a single block, split it when the shape allows.
    if (_round_up(M, tm) // tm) * (_round_up(N, tn) // tn) == 1:
        if tn >= 256:
            tn = max(128, ((tn // 2) // 128) * 128)
        elif tm >= 2 * align_m:
            tm = max(align_m, ((tm // 2) // align_m) * align_m)

    M_pad, N_pad, K_pad = _round_up(M, tm), _round_up(N, tn), _round_up(K, tk)
    gm, gn, gk = M_pad // tm, N_pad // tn, K_pad // tk
    multi_k = gk > 1

    # Weight-prep policy (review): when weight tiles are re-streamed for several
    # M blocks, fold alpha*dW into the weights ONCE up front (plain XLA
    # elementwise) instead of paying the f32 upcast+FMA+downcast on the VALU
    # every grid step and streaming dW from HBM gm times.
    fuse_delta = has_delta and gm == 1
    if has_delta and not fuse_delta:
        a32 = jnp.asarray(alpha, jnp.float32)
        weight = (weight.astype(jnp.float32)
                  + a32 * delta_weight.astype(jnp.float32)).astype(weight.dtype)

    # Zero-pad to tile multiples (cdiv-style grid). Padded K contributes zeros;
    # padded M/N rows/cols are sliced off the output.
    def pad2(a, r, c):
        dr, dc = r - a.shape[0], c - a.shape[1]
        return jnp.pad(a, ((0, dr), (0, dc))) if (dr or dc) else a

    x_p = pad2(x, M_pad, K_pad)
    w_p = pad2(weight, N_pad, K_pad)

    if multi_k:
        x_map = lambda i, j, k: (i, k)
        w_map = lambda i, j, k: (j, k)
        b_map = lambda i, j, k: (0, j)
        o_map = lambda i, j, k: (i, j)
        s_map = lambda i, j, k: (0, 0)
        grid = (gm, gn, gk)
        semantics = ("parallel", "parallel", "arbitrary")
        scratch = [pltpu.VMEM((tm, tn), jnp.float32)]
    else:
        x_map = lambda i, j: (i, 0)
        w_map = lambda i, j: (j, 0)
        b_map = lambda i, j: (0, j)
        o_map = lambda i, j: (i, j)
        s_map = lambda i, j: (0, 0)
        grid = (gm, gn)
        semantics = ("parallel", "parallel")
        scratch = []

    in_specs, inputs = [], []
    if fuse_delta:
        in_specs.append(pl.BlockSpec((1, 1), s_map,
                                     memory_space=pltpu.MemorySpace.SMEM))
        inputs.append(jnp.asarray(alpha, jnp.float32).reshape(1, 1))
    in_specs.append(pl.BlockSpec((tm, tk), x_map)); inputs.append(x_p)
    in_specs.append(pl.BlockSpec((tn, tk), w_map)); inputs.append(w_p)
    if fuse_delta:
        in_specs.append(pl.BlockSpec((tn, tk), w_map))
        inputs.append(pad2(delta_weight, N_pad, K_pad))
    if has_bias:
        b_p = bias if N_pad == N else jnp.pad(bias, (0, N_pad - N))
        in_specs.append(pl.BlockSpec((1, tn), b_map))
        inputs.append(b_p.reshape(1, N_pad))

    kernel = _make_kernel(fuse_delta, has_bias, multi_k, compute_dtype)

    itemsz = lambda a: jnp.dtype(a.dtype).itemsize
    flops = 2 * M * N * K + (3 * N * K if has_delta else 0)
    bytes_accessed = (M * K * itemsz(x) + N * K * itemsz(weight)
                      + M * N * jnp.dtype(out_dtype).itemsize)
    if fuse_delta:
        bytes_accessed += N * K * itemsz(delta_weight)
    if has_bias:
        bytes_accessed += N * itemsz(bias)

    vmem_limit = _vmem_limit_bytes(
        tm, tn, tk, x.dtype, weight.dtype, fuse_delta, has_bias,
        bias.dtype if has_bias else jnp.float32, out_dtype, multi_k)

    out = pl.pallas_call(
        kernel,
        out_shape=jax.ShapeDtypeStruct((M_pad, N_pad), out_dtype),
        grid_spec=pltpu.PrefetchScalarGridSpec(
            num_scalar_prefetch=0,
            grid=grid,
            in_specs=in_specs,
            out_specs=pl.BlockSpec((tm, tn), o_map),
            scratch_shapes=scratch,
        ),
        compiler_params=pltpu.CompilerParams(
            dimension_semantics=semantics,
            vmem_limit_bytes=vmem_limit,
        ),
        cost_estimate=pl.CostEstimate(flops=flops, transcendentals=0,
                                      bytes_accessed=bytes_accessed),
    )(*inputs)

    if M_pad != M or N_pad != N:
        out = out[:M, :N]
    return out


# ------------------------- deterministic param init ------------------------

def init_additive_linear_params(key, in_features, out_features, bias=False):
    """Mirrors AdditiveLinear.__init__:
       weight: kaiming_uniform_(a=sqrt(5)) -> U(-bound, bound),
               bound = sqrt(6 / ((1 + a^2) * fan_in)) = 1/sqrt(fan_in)
       delta_weight: zeros
       bias: zeros (if enabled)
    """
    gain = math.sqrt(2.0 / (1.0 + 5.0))                 # a = sqrt(5)
    bound = gain * math.sqrt(3.0 / in_features)         # == 1/sqrt(in_features)
    weight = jax.random.uniform(
        key, (out_features, in_features), jnp.float32, minval=-bound, maxval=bound)
    delta_weight = jnp.zeros((out_features, in_features), jnp.float32)
    b = jnp.zeros((out_features,), jnp.float32) if bias else None
    return weight, delta_weight, b


# ----------------------------------- main -----------------------------------

if __name__ == "__main__":
    key = jax.random.PRNGKey(0)
    k_x, k_w, k_dw, k_b, k_x2, k_w2, k_dw2, k_b2 = jax.random.split(key, 8)

    batch, in_features, out_features = 128, 256, 256

    x = jax.random.normal(k_x, (batch, in_features), jnp.float32)
    weight, delta_weight, bias = init_additive_linear_params(
        k_w, in_features, out_features, bias=True)
    # Nonzero delta / bias so the additive path is actually exercised.
    delta_weight = 0.01 * jax.random.normal(
        k_dw, (out_features, in_features), jnp.float32)
    bias = 0.1 * jax.random.normal(k_b, (out_features,), jnp.float32)

    def ref(a):
        return x @ (weight + a * delta_weight).T

    # 1) gm == 1 with a K-grid reduction: in-kernel fused delta + f32 accumulator.
    out1 = jax.block_until_ready(
        additive_linear(x, weight, delta_weight, None, alpha=1.0,
                        tile_m=128, tile_n=128, tile_k=128))
    assert out1.shape == (batch, out_features)
    assert jnp.allclose(out1, ref(1.0), atol=1e-4, rtol=1e-5)

    # 2) gm >= 2: wrapper precomputes W_eff once (no per-tile VALU weight prep).
    out2 = jax.block_until_ready(
        additive_linear(x, weight, delta_weight, bias, alpha=0.37,
                        tile_m=64, tile_n=128, tile_k=128))
    assert jnp.allclose(out2, ref(0.37) + bias[None, :], atol=1e-4, rtol=1e-5)

    # 3) default (large) tiles: single-K direct store + megacore grid split.
    out3 = jax.block_until_ready(
        additive_linear(x, weight, delta_weight, bias, alpha=0.5))
    assert jnp.allclose(out3, ref(0.5) + bias[None, :], atol=1e-4, rtol=1e-5)

    # 4) static alpha == 0 fast path: delta_weight HBM stream skipped entirely.
    out4 = jax.block_until_ready(
        additive_linear(x, weight, delta_weight, bias, alpha=0.0))
    assert jnp.allclose(out4, x @ weight.T + bias[None, :], atol=1e-4, rtol=1e-5)

    # 5) non-divisible shapes: cdiv-style padding in M / N / K.
    M2, K2n, N2 = 48, 200, 136
    x2 = jax.random.normal(k_x2, (M2, K2n), jnp.float32)
    w2 = jax.random.normal(k_w2, (N2, K2n), jnp.float32) / math.sqrt(K2n)
    dw2 = 0.01 * jax.random.normal(k_dw2, (N2, K2n), jnp.float32)
    b2 = 0.1 * jax.random.normal(k_b2, (N2,), jnp.float32)
    out5 = jax.block_until_ready(additive_linear(x2, w2, dw2, b2, alpha=0.8))
    assert out5.shape == (M2, N2)
    assert jnp.allclose(out5, x2 @ (w2 + 0.8 * dw2).T + b2[None, :],
                        atol=1e-4, rtol=1e-5)

    # 6) optional bf16 MXU-input policy (f32 accumulation) - loose tolerance.
    out6 = jax.block_until_ready(
        additive_linear(x, weight, delta_weight, bias, alpha=1.0,
                        mxu_input_dtype=jnp.bfloat16))
    assert jnp.allclose(out6, ref(1.0) + bias[None, :], atol=5e-2, rtol=5e-2)

    print("KERNEL_OK")
</pallas_src>

<mosaic_0001>
module attributes {stable_mosaic.version = 11 : i64} {
  func.func @kernel(%arg0: i32, %arg1: i32, %arg2: i32, %arg3: memref<1x1xf32, #tpu.memory_space<smem>>, %arg4: memref<128x128xf32, #tpu.memory_space<vmem>>, %arg5: memref<128x128xf32, #tpu.memory_space<vmem>>, %arg6: memref<128x128xf32, #tpu.memory_space<vmem>>, %arg7: memref<128x128xf32, #tpu.memory_space<vmem>>, %arg8: memref<128x128xf32, #tpu.memory_space<vmem>>) attributes {dimension_semantics = [#tpu.dimension_semantics<parallel>, #tpu.dimension_semantics<parallel>, #tpu.dimension_semantics<arbitrary>], iteration_bounds = array<i64: 1, 2, 2>, scalar_prefetch = 0 : i64, scratch_operands = 1 : i64, tpu.core_type = #tpu.core_type<tc>, window_params = [{transform_indices = @transform_0, window_bounds = array<i64: 1, 1>}, {transform_indices = @transform_1, window_bounds = array<i64: 128, 128>}, {transform_indices = @transform_2, window_bounds = array<i64: 128, 128>}, {transform_indices = @transform_3, window_bounds = array<i64: 128, 128>}, {transform_indices = @transform_4, window_bounds = array<i64: 128, 128>}]} {
    %c0_i32 = arith.constant 0 : i32
    %0 = arith.cmpi eq, %arg2, %c0_i32 : i32
    %1 = arith.extui %0 : i1 to i32
    %c0_i32_0 = arith.constant 0 : i32
    %2 = arith.cmpi ne, %1, %c0_i32_0 : i32
    scf.if %2 {
      %cst_13 = arith.constant 0.000000e+00 : f32
      %17 = vector.broadcast %cst_13 : f32 to vector<128x128xf32>
      %c0_14 = arith.constant 0 : index
      %c0_15 = arith.constant 0 : index
      %18 = vector.load %arg8[%c0_14, %c0_15] : memref<128x128xf32, #tpu.memory_space<vmem>>, vector<128x128xf32>
      tpu.vector_store %arg8[%c0_14, %c0_15], %17 {strides = array<i32>} : memref<128x128xf32, #tpu.memory_space<vmem>>, vector<128x128xf32>,
    } else {
    }
    %c0 = arith.constant 0 : index
    %c0_1 = arith.constant 0 : index
    %3 = vector.load %arg5[%c0, %c0_1] : memref<128x128xf32, #tpu.memory_space<vmem>>, vector<128x128xf32>
    %c0_2 = arith.constant 0 : index
    %c0_3 = arith.constant 0 : index
    %4 = memref.load %arg3[%c0_2, %c0_3] : memref<1x1xf32, #tpu.memory_space<smem>>
    %c0_4 = arith.constant 0 : index
    %c0_5 = arith.constant 0 : index
    %5 = vector.load %arg6[%c0_4, %c0_5] : memref<128x128xf32, #tpu.memory_space<vmem>>, vector<128x128xf32>
    %6 = vector.broadcast %4 : f32 to vector<128x128xf32>
    %7 = arith.mulf %6, %5 : vector<128x128xf32>
    %8 = arith.addf %3, %7 : vector<128x128xf32>
    %c0_6 = arith.constant 0 : index
    %c0_7 = arith.constant 0 : index
    %9 = vector.load %arg4[%c0_6, %c0_7] : memref<128x128xf32, #tpu.memory_space<vmem>>, vector<128x128xf32>
    %cst = arith.constant dense<0.000000e+00> : vector<128x128xf32>
    %10 = tpu.matmul %9, %8, %cst {dimension_numbers = #tpu.dot_dimension_numbers<[1], [1], [0], [0], [0, 0, 1, 0], [], []>} : vector<128x128xf32>, vector<128x128xf32>, vector<128x128xf32> -> vector<128x128xf32>
    %c0_8 = arith.constant 0 : index
    %c0_9 = arith.constant 0 : index
    %11 = vector.load %arg8[%c0_8, %c0_9] : memref<128x128xf32, #tpu.memory_space<vmem>>, vector<128x128xf32>
    %12 = arith.addf %11, %10 : vector<128x128xf32>
    %c0_10 = arith.constant 0 : index
    %c0_11 = arith.constant 0 : index
    %13 = vector.load %arg8[%c0_10, %c0_11] : memref<128x128xf32, #tpu.memory_space<vmem>>, vector<128x128xf32>
    tpu.vector_store %arg8[%c0_10, %c0_11], %12 {strides = array<i32>} : memref<128x128xf32, #tpu.memory_space<vmem>>, vector<128x128xf32>,
    %c1_i32 = arith.constant 1 : i32
    %14 = arith.cmpi eq, %arg2, %c1_i32 : i32
    %15 = arith.extui %14 : i1 to i32
    %c0_i32_12 = arith.constant 0 : i32
    %16 = arith.cmpi ne, %15, %c0_i32_12 : i32
    scf.if %16 {
      %c0_13 = arith.constant 0 : index
      %c0_14 = arith.constant 0 : index
      %17 = vector.load %arg8[%c0_13, %c0_14] : memref<128x128xf32, #tpu.memory_space<vmem>>, vector<128x128xf32>
      %c0_15 = arith.constant 0 : index
      %c0_16 = arith.constant 0 : index
      %18 = vector.load %arg7[%c0_15, %c0_16] : memref<128x128xf32, #tpu.memory_space<vmem>>, vector<128x128xf32>
      tpu.vector_store %arg7[%c0_15, %c0_16], %17 {strides = array<i32>} : memref<128x128xf32, #tpu.memory_space<vmem>>, vector<128x128xf32>,
    } else {
    }
    return
  }
  func.func @transform_0(%arg0: i32, %arg1: i32, %arg2: i32) -> (i32, i32) {
    %c0_i32 = arith.constant 0 : i32
    %c0_i32_0 = arith.constant 0 : i32
    %c0_i32_1 = arith.constant 0 : i32
    return %c0_i32, %c0_i32_0 : i32, i32
  }
  func.func @transform_1(%arg0: i32, %arg1: i32, %arg2: i32) -> (i32, i32) {
    %c0_i32 = arith.constant 0 : i32
    return %arg0, %arg2 : i32, i32
  }
  func.func @transform_2(%arg0: i32, %arg1: i32, %arg2: i32) -> (i32, i32) {
    %c0_i32 = arith.constant 0 : i32
    return %arg1, %arg2 : i32, i32
  }
  func.func @transform_3(%arg0: i32, %arg1: i32, %arg2: i32) -> (i32, i32) {
    %c0_i32 = arith.constant 0 : i32
    return %arg1, %arg2 : i32, i32
  }
  func.func @transform_4(%arg0: i32, %arg1: i32, %arg2: i32) -> (i32, i32) {
    %c0_i32 = arith.constant 0 : i32
    return %arg0, %arg1 : i32, i32
  }
}

</mosaic_0001>

<bundles_post_ra>
// kernel: tpu_custom_call.1
= control target key start
LH: loop header
LB: loop body
LE: loop exit
PB: predicated region body
PF: predicated region fallthrough
CT: control target
= control target key end

     0   :  { %s1881_s0 = inlined_call_operand.<no memory space> [shape: f32[1,1], index: 0, kind: input, shape index: {}]   ;;  %s1882_s1 = inlined_call_operand.hbm [shape: f32[128,256], index: 1, kind: input, shape index: {}]   ;;  %s1883_s2 = inlined_call_operand.hbm [shape: f32[256,256], index: 2, kind: input, shape index: {}]   ;;  %s1884_s3 = inlined_call_operand.hbm [shape: f32[256,256], index: 3, kind: input, shape index: {}]   ;;  %s1885_s4 = inlined_call_operand.hbm [shape: f32[128,256], index: 4, kind: output, shape index: {}]  }
   0x1   :  { %1908 = sst [smem:[#allocation24_spill]] %s1882_s1 }
   0x2   :  { %1909 = sst [smem:[#allocation25_spill]] %s1885_s4 }
   0x3   :  { %9 = sst [smem:[#allocation3]] %s1881_s0 }
   0x4   :  { %10 = vsyncpa [#allocation5], 0 }
   0x5   :  { %12 = vsyncpa [#allocation5 + $0x1], 0 }
   0x6   :  { %13 = vsyncpa [#allocation8], 0 }
   0x7   :  { %15 = vsyncpa [#allocation8 + $0x1], 0 }
   0x8   :  { %16 = vsyncpa [#allocation6], 0 }
   0x9   :  { %18 = vsyncpa [#allocation6 + $0x1], 0  ;;  %s1403_s17 = smov 0   ;;  %s1405_s18 = smov 0  }
   0xa   :  { %s1407_s19 = smov 0   ;;  %s1409_s20 = smov 0  }
   0xb   :  { %s1411_s21 = smov 0   ;;  %s1413_s22 = smov 0  }
   0xc   :  { %s1415_s23 = smov 0   ;;  %s1417_s0 = smov 0  }
   0xd   :  { %s1419_s24 = smov 0   ;;  %s1421_s25 = smov 0  }
   0xe   :  { %s1423_s26 = smov 0   ;;  %s1425_s27 = smov 0  }
   0xf   :  { %s1427_s28 = smov 0   ;;  %s1429_s29 = smov 0  }
  0x10 LB: > { %1910 = sst [smem:[#allocation14_spill]] %s1318_s19  ;;  %s1472_s30 = sadd.s32 4294967295, %s1362_s29   ;;  %s1362_s29 = sphi %s1429_s29, %s24_s29   ;;  %s1358_s28 = sphi %s1427_s28, %s1955_s28   ;;  %s1354_s27 = sphi %s1425_s27, %s1964_s27   ;;  %s1350_s26 = sphi %s1423_s26, %s1953_s26   ;;  %s1346_s25 = sphi %s1421_s25, %s1963_s25   ;;  %s1342_s24 = sphi %s1419_s24, %s1962_s24   ;;  %s1338_s0 = sphi %s1417_s0, %s1961_s0   ;;  %s1334_s23 = sphi %s1415_s23, %s1960_s23   ;;  %s1330_s22 = sphi %s1413_s22, %s1952_s22   ;;  %s1326_s21 = sphi %s1411_s21, %s1959_s21   ;;  %s1322_s20 = sphi %s1409_s20, %s1958_s20   ;;  %s1318_s19 = sphi %s1407_s19, %s1950_s19   ;;  %s1314_s18 = sphi %s1405_s18, %s1957_s18   ;;  %s1310_s17 = sphi %s1403_s17, %s1956_s17  }
  0x11   : > { %1911 = sst [smem:[#allocation15_spill]] %s1330_s22  ;;  %s817_s5 = sadd.s32 4294967294, %s1362_s29  }
  0x12   : > { %1912 = sst [smem:[#allocation16_spill]] %s1350_s26  ;;  %s36_s6 = sadd.s32 1, %s1354_s27 }
  0x13   : > { %1913 = sst [smem:[#allocation17_spill]] %s1358_s28  ;;  %p37_p0 = scmp.ge.s32.totalorder %s36_s6, 2 }
  0x14   : > { %s39_s7 = sadd.s32 1, %s1358_s28  ;;  %p1897_p1 = scmp.eq.s32.totalorder %s1362_s29, 0 }
  0x15   : > { %p1896_p2 = scmp.eq.s32.totalorder %s1472_s30, 0  ;;  %s1966_s6 = smov (%p37_p0, %s36_s6), 0 }
  0x16   : > { %1914 = sst [smem:[#allocation18_spill]] %s1966_s6  ;;  %s1968_s7 = smov (!%p37_p0, %s39_s7), %s1358_s28 }
  0x17   : > { %s101_s8 = sadd.s32 1, %s1330_s22  ;;  %p108_p3 = scmp.ne.s32.totalorder %s1330_s22, %s1326_s21 }
  0x18   : > { %p41_p4 = scmp.ge.s32.totalorder %s1968_s7, 2  ;;  %s1487_s9 = ssub.s32 %s1354_s27, %s1966_s6 }
  0x19   : > { %p1491_p5 = por %p108_p3, %p1897_p1  ;;  %p114_p6 = scmp.ne.s32.totalorder %s1326_s21, %s1322_s20 }
  0x1a   : > { %s1970_s7 = smov (%p41_p4, %s1968_s7), 0  ;;  %s157_s12 = sadd.s32 1, %s1318_s19 }
  0x1b   : > { %1916 = sst [smem:[#allocation19_spill]] %s1970_s7  ;;  %p1500_p7 = por %p114_p6, %p1896_p2 }
  0x1c   : > { %s96_s13 = ssub.s32 %s1358_s28, %s1970_s7  ;;  %p167_p8 = scmp.ne.s32.totalorder %s1318_s19, %s1314_s18 }
  0x1d   : > { %s1917_s11 = scalar_select %p1500_p7, 1, 0 }
  0x1e   : > { %s98_s14 = sor.u32 %s96_s13, %s1487_s9  ;;  %p155_p9 = scmp.eq.s32.totalorder %s96_s13, 0 }
  0x1f   : > { %p99_p10 = scmp.eq.s32.totalorder %s98_s14, 0  ;;  %p168_p11 = scmp.eq.s32.totalorder %s1472_s30, 3 }
  0x20   : > { %s1512_s15 = scalar_select %p155_p9, %s1318_s19, %s157_s12  }
  0x21   : > { %s1515_s16 = scalar_select %p99_p10, %s1330_s22, %s101_s8  }
  0x22   : > { %1918 = sst [smem:[#allocation20_spill]] %s1512_s15  ;;  %p1517_p12 = por %p168_p11, %p167_p8 }
  0x23   : > { %1919 = sst [smem:[#allocation21_spill]] %s1515_s16  ;;  %p173_p13 = scmp.ne.s32.totalorder %s1314_s18, %s1310_s17 }
  0x24   : > { %s1920_s20 = scalar_select %p1517_p12, 1, 0 }
  0x25   : > { %p174_p0 = scmp.eq.s32.totalorder %s817_s5, 3  ;;  %p1895_p3 = scmp.lt.s32.totalorder %s1362_s29, 4 }
  0x26   : > { %1921 = sst [smem:[#allocation22_spill]] %s1920_s20  ;;  %s220_s13 = sand.u32 1, %s1362_s29  }
  0x27   : > { %p1524_p4 = por %p174_p0, %p173_p13  ;;  %s222_s14 = sand.u32 1, %s1330_s22  }
  0x28   : > { %s822_s12 = sshll.u32 %s222_s14, 7  ;;  %s841_s6 = sshll.u32 %s1358_s28, 5 }
  0x29   : > { %s1922_s7 = scalar_select %p1524_p4, 1, 0 }
  0x2a   : > { %s230_s8 = sadd.s32 %s1354_s27, %s841_s6  ;;  %s224_s15 = scalar_lea.vmem [#allocation7], %s822_s12 }
  0x2b   : > { %1923 = sst [smem:[#allocation23_spill]] %s1922_s7  ;;  %s825_s16 = sshll.u32 %s230_s8, 7 }
  0x2c   : > { %s233_s19 = sshll.u32 %s224_s15, 4  ;;  %s1535_s20 = scalar_lea.hbm %s1883_s2, %s825_s16  ;;  %s1537_s19 = int_to_ptr.vmem [resolvable:$true] %s233_s19 }
  0x2d   : > { %p1543_p6 = pnand %p1895_p3, %p1491_p5  ;;  %s1551_s4 = scalar_lea.hbm %s1884_s3, %s825_s16 }
  0x2e   : > { %s247_s26 = scalar_lea.vmem [#allocation9], %s822_s12  ;;  %s1555_s8 = scalar_lea.sflag [#allocation8], %s220_s13 }
  0x2f   : > { %s1553_s14 = sshll.u32 %s247_s26, 4  ;;  %s1122_s10 = scalar_lea.hbm %s1535_s20, 2048  ;;  %s1624_s14 = int_to_ptr.vmem [resolvable:$true] %s1553_s14 }
  0x30   : > { %p1123_p9 = scmp.ne.s32.totalorder %s1535_s20, %s1122_s10  ;;  %p1905_p5 = pneg %p1543_p6 }
  0x31   : > { %s1127_s7 = scalar_lea.hbm %s1883_s2, 8192  ;;  %p1128_p13 = scmp.lt.u32.totalorder %s1535_s20, %s1883_s2 }
  0x32   : > { %p1125_p10 = pnand %p1905_p5, %p1123_p9  ;;  %p1129_p0 = scmp.lt.u32.totalorder %s1127_s7, %s1122_s10 }
  0x33   : > { %p1131_p2 = scmp.lt.u32.totalorder %s1122_s10, %s1535_s20 }
  0x34   : > { %p1126_p11 = pneg %p1125_p10  ;;  %p1130_p3 = por %p1129_p0, %p1128_p13 }
  0x36   : > { %p1132_p1 = por %p1131_p2, %p1130_p3 }
  0x38   : > { %p1133_p8 = pnand %p1132_p1, %p1126_p11 }
  0x3a   : > { %1136 = shalt.err (!%p1133_p8)
}
  0x3b   : > { %s1137_s13 = scalar_lea.vmem %s1537_s19, 2048  ;;  %s1364_s22 = smov [#allocation7]  }
  0x3c   : > { %p1138_p9 = scmp.ne.s32.totalorder %s1537_s19, %s1137_s13  ;;  %s1142_s28 = sshll.u32 %s1364_s22, 4  ;;  %s1143_s28 = int_to_ptr.vmem [resolvable:$false] %s1142_s28 }
  0x3d   : > { %s1144_s12 = scalar_lea.vmem %s1143_s28, 4096  ;;  %p1145_p12 = scmp.lt.s32.totalorder %s1537_s19, %s1143_s28 }
  0x3e   : > { %p1140_p10 = pnand %p1138_p9, %p1905_p5  ;;  %p1146_p13 = scmp.lt.s32.totalorder %s1144_s12, %s1137_s13 }
  0x40   : > { %p1141_p4 = pneg %p1140_p10  ;;  %p1147_p0 = por %p1146_p13, %p1145_p12 }
  0x42   : > { %p1148_p2 = pnand %p1147_p0, %p1141_p4 }
  0x44   : > { %1151 = shalt.err (!%p1148_p2)
}
  0x45   : > { %s1899_s7 = smov 256   ;;  %s1901_s15 = smov 128  }
  0x46   : > { %s1903_s26 = smov 8   ;;  %p830_p1 = scmp.ge.s32.totalorder %s1362_s29, 1 }
  0x47   : > { %993 = dma.hbm_to_vmem [thread:$0]  (!%p1543_p6), %s1535_s20, 2048, %s1537_s19, %s1555_s8, %s1899_s7, %s1901_s15, %s1903_s26  }
  0x48   : > { %p264_p12 = scmp.lt.s32.totalorder %s1362_s29, 5  ;;  %s73_s6 = sadd.s32 1, %s1342_s24 }
  0x49   : > { %p1926_p4 = scmp.eq.s32.totalorder %s1487_s9, 0  ;;  %p80_p8 = scmp.ne.s32.totalorder %s1342_s24, %s1338_s0 }
  0x4a   : > { %p1588_p3 = pnand %p830_p1, %p264_p12  ;;  %p86_p11 = scmp.ne.s32.totalorder %s1338_s0, %s1334_s23 }
  0x4b   : > { %s1596_s16 = scalar_select %p1926_p4, %s1342_s24, %s73_s6  }
  0x4c   : > { %s1925_s10 = scalar_select %p1588_p3, 1, 0 }
  0x4d   : > { %s197_s13 = sand.u32 1, %s1342_s24   ;;  %s821_s22 = sshll.u32 %s1354_s27, 7 }
  0x4e   : > { %p1927_p9 = scmp.eq.s32.totalorder %s1362_s29, 0  ;;  %p1928_p13 = scmp.eq.s32.totalorder %s1472_s30, 0 }
  0x4f   : > { %s820_s20 = sshll.u32 %s197_s13, 7  ;;  %s1930_s1 = sld [smem:[#allocation24_spill]] }
  0x50   : > { %p82_p10 = por %p1927_p9, %p80_p8  ;;  %p1608_p0 = por %p1928_p13, %p86_p11 }
  0x51   : > { %s201_s23 = scalar_lea.vmem [#allocation4], %s820_s20  ;;  %p1931_p2 = scmp.lt.s32.totalorder %s1362_s29, 4 }
  0x52   : > { %s1929_s19 = scalar_select %p1608_p0, 1, 0 }
  0x53   : > { %s210_s9 = sshll.u32 %s201_s23, 4  ;;  %p1619_p1 = pnand %p1931_p2, %p82_p10  ;;  %s1626_s9 = int_to_ptr.vmem [resolvable:$true] %s210_s9 }
  0x54   : > { %s1628_s28 = scalar_lea.sflag [#allocation5], %s197_s13 }
  0x55   : > { %s1615_s7 = scalar_lea.hbm %s1930_s1, %s821_s22  ;;  %p1154_p4 = pneg %p1619_p1 }
  0x56   : > { %s1152_s22 = scalar_lea.hbm %s1615_s7, 2048  ;;  %s1157_s23 = scalar_lea.hbm %s1930_s1, 4096 }
  0x57   : > { %p1153_p12 = scmp.ne.s32.totalorder %s1615_s7, %s1152_s22  ;;  %p1158_p9 = scmp.lt.u32.totalorder %s1615_s7, %s1930_s1 }
  0x58   : > { %p1159_p10 = scmp.lt.u32.totalorder %s1157_s23, %s1152_s22  ;;  %p1161_p2 = scmp.lt.u32.totalorder %s1152_s22, %s1615_s7 }
  0x59   : > { %p1155_p8 = pnand %p1154_p4, %p1153_p12 }
  0x5a   : > { %p1160_p13 = por %p1159_p10, %p1158_p9 }
  0x5b   : > { %p1156_p11 = pneg %p1155_p8 }
  0x5c   : > { %p1162_p5 = por %p1161_p2, %p1160_p13 }
  0x5e   : > { %p1163_p7 = pnand %p1162_p5, %p1156_p11 }
  0x60   : > { %1166 = shalt.err (!%p1163_p7)
}
  0x61   : > { %s1167_s13 = scalar_lea.vmem %s1626_s9, 2048  ;;  %s1368_s20 = smov [#allocation4]  }
  0x62   : > { %p1168_p12 = scmp.ne.s32.totalorder %s1626_s9, %s1167_s13  ;;  %s1172_s12 = sshll.u32 %s1368_s20, 4  ;;  %s1173_s12 = int_to_ptr.vmem [resolvable:$false] %s1172_s12 }
  0x63   : > { %s1174_s15 = scalar_lea.vmem %s1173_s12, 4096  ;;  %p1175_p3 = scmp.lt.s32.totalorder %s1626_s9, %s1173_s12 }
  0x64   : > { %p1170_p8 = pnand %p1168_p12, %p1154_p4  ;;  %p1176_p9 = scmp.lt.s32.totalorder %s1174_s15, %s1167_s13 }
  0x66   : > { %p1171_p0 = pneg %p1170_p8  ;;  %p1177_p10 = por %p1176_p9, %p1175_p3 }
  0x68   : > { %p1178_p13 = pnand %p1177_p10, %p1171_p0 }
  0x6a   : > { %1181 = shalt.err (!%p1178_p13)
}
  0x6b   : > { %s1933_s26 = smov 8   ;;  %s1934_s22 = smov 128  }
  0x6c   : > { %s1935_s23 = smov 256   ;;  %s1182_s20 = scalar_lea.hbm %s1551_s4, 2048 }
  0x6d   : > { %990 = dma.hbm_to_vmem [thread:$0]  (!%p1619_p1), %s1615_s7, 2048, %s1626_s9, %s1628_s28, %s1935_s23, %s1934_s22, %s1933_s26  }
  0x6e   : > { %p1183_p7 = scmp.ne.s32.totalorder %s1551_s4, %s1182_s20  ;;  %p1936_p5 = pneg %p1543_p6 }
  0x6f   : > { %s1187_s12 = scalar_lea.hbm %s1884_s3, 8192  ;;  %p1188_p4 = scmp.lt.u32.totalorder %s1551_s4, %s1884_s3 }
  0x70   : > { %p1185_p3 = pnand %p1183_p7, %p1936_p5  ;;  %p1189_p11 = scmp.lt.u32.totalorder %s1187_s12, %s1182_s20 }
  0x71   : > { %p1191_p12 = scmp.lt.u32.totalorder %s1182_s20, %s1551_s4 }
  0x72   : > { %p1186_p0 = pneg %p1185_p3  ;;  %p1190_p2 = por %p1189_p11, %p1188_p4 }
  0x74   : > { %p1192_p8 = por %p1191_p12, %p1190_p2 }
  0x76   : > { %p1193_p9 = pnand %p1192_p8, %p1186_p0 }
  0x78   : > { %1196 = shalt.err (!%p1193_p9)
}
  0x79   : > { %s1197_s7 = scalar_lea.vmem %s1624_s14, 2048  ;;  %p1937_p10 = pmov %p1936_p5 }
  0x7a   : > { %p1198_p1 = scmp.ne.s32.totalorder %s1624_s14, %s1197_s7  ;;  %s1369_s9 = smov [#allocation9]  }
  0x7b   : > { %s1202_s28 = sshll.u32 %s1369_s9, 4  ;;  %s1203_s28 = int_to_ptr.vmem [resolvable:$false] %s1202_s28 }
  0x7c   : > { %p1200_p13 = pnand %p1198_p1, %p1937_p10  ;;  %s1204_s1 = scalar_lea.vmem %s1203_s28, 4096 }
  0x7d   : > { %p1205_p5 = scmp.lt.s32.totalorder %s1624_s14, %s1203_s28  ;;  %p1206_p3 = scmp.lt.s32.totalorder %s1204_s1, %s1197_s7 }
  0x7e   : > { %p1201_p7 = pneg %p1200_p13 }
  0x7f   : > { %p1207_p4 = por %p1206_p3, %p1205_p5 }
  0x81   : > { %p1208_p11 = pnand %p1207_p4, %p1201_p7 }
  0x83   : > { %1211 = shalt.err (!%p1208_p11)
}
  0x84   : > { %996 = dma.hbm_to_vmem [thread:$0]  (!%p1543_p6), %s1551_s4, 2048, %s1624_s14, %s1555_s8, %s1935_s23, %s1934_s22, %s1933_s26  }
  0x85   : > { %p1938_p0 = scmp.ne.s32.totalorder %s1925_s10, 0 }
  0x86   : > { %s270_s20 = sand.u32 (!%p1938_p0), 1, %s1338_s0   ;;  %p1939_p2 = scmp.ne.s32.totalorder (!%p1938_p0), %s1929_s19, 0 }
  0x87   : > { %268 = sbr.rel (%p1938_p0) target bundleno = 502 (0x1f6), region = 36  ;;  %s831_s13 = sshll.u32 (!%p1938_p0), %s270_s20, 7 }
  0x88   : > { %s271_s6 = scalar_lea.sflag (!%p1938_p0), [#allocation5], %s270_s20  ;;  %s1689_s12 = scalar_lea.vmem (!%p1938_p0), [#allocation4], %s831_s13 }
  0x8e   : > { %1297 = dma.done.wait (%p1939_p2), %s271_s6, 2048  }
  0x8f   : > { %1299 = vsyncadd (%p1939_p2), %s271_s6, 4294965248  ;;  %s279_s5 = sand.u32 1, %s1472_s30   ;;  %s281_s4 = sand.u32 1, %s1326_s21  }
  0x90   : > { %s832_s14 = sshll.u32 %s281_s4, 7  ;;  %s280_s8 = scalar_lea.sflag [#allocation8], %s279_s5 }
  0x91   : > { %s1697_s10 = scalar_lea.vmem [#allocation7], %s832_s14  ;;  %p1940_p6 = scmp.ne.s32.totalorder %s1917_s11, 0 }
  0x93   : > { %1301 = dma.done.wait (%p1940_p6), %s280_s8, 4096  }
  0x94   : > { %1303 = vsyncadd (%p1940_p6), %s280_s8, 4294963200  ;;  %s324_s26 = sand.u32 1, %s1314_s18   ;;  %s1706_s22 = scalar_lea.vmem [#allocation9], %s832_s14 }
  0x95   : > { %s834_s19 = sshll.u32 %s324_s26, 7  ;;  %p835_p12 = scmp.ne.s32.totalorder %s1346_s25, 0 }
  0x96   : > { %s1708_s23 = scalar_lea.vmem [#allocation10], %s834_s19  ;;  %v1370_v0 = vmov (!%p835_p12), 0.0  }
  0x97   : > { %334 = sbr.rel (%p835_p12) target bundleno = 159 (0x9f), region = 52  ;;  %335 = vst [vmem:[#allocation2] sm:$0xff] (!%p835_p12), %v1370_v0  ;;  %336 = vst [vmem:[#allocation2 + $0x8] sm:$0xff] (!%p835_p12), %v1370_v0 }
  0x98   : > { %337 = vst [vmem:[#allocation2 + $0x10] sm:$0xff] (!%p835_p12), %v1370_v0  ;;  %338 = vst [vmem:[#allocation2 + $0x18] sm:$0xff] (!%p835_p12), %v1370_v0 }
  0x99   : > { %339 = vst [vmem:[#allocation2 + $0x20] sm:$0xff] (!%p835_p12), %v1370_v0  ;;  %340 = vst [vmem:[#allocation2 + $0x28] sm:$0xff] (!%p835_p12), %v1370_v0 }
  0x9a   : > { %341 = vst [vmem:[#allocation2 + $0x30] sm:$0xff] (!%p835_p12), %v1370_v0  ;;  %342 = vst [vmem:[#allocation2 + $0x38] sm:$0xff] (!%p835_p12), %v1370_v0 }
  0x9b   : > { %343 = vst [vmem:[#allocation2 + $0x40] sm:$0xff] (!%p835_p12), %v1370_v0  ;;  %344 = vst [vmem:[#allocation2 + $0x48] sm:$0xff] (!%p835_p12), %v1370_v0 }
  0x9c   : > { %345 = vst [vmem:[#allocation2 + $0x50] sm:$0xff] (!%p835_p12), %v1370_v0  ;;  %346 = vst [vmem:[#allocation2 + $0x58] sm:$0xff] (!%p835_p12), %v1370_v0 }
  0x9d   : > { %347 = vst [vmem:[#allocation2 + $0x60] sm:$0xff] (!%p835_p12), %v1370_v0  ;;  %348 = vst [vmem:[#allocation2 + $0x68] sm:$0xff] (!%p835_p12), %v1370_v0 }
  0x9e   : > { %349 = vst [vmem:[#allocation2 + $0x70] sm:$0xff] %v1370_v0  ;;  %350 = vst [vmem:[#allocation2 + $0x78] sm:$0xff] %v1370_v0 }
  0x9f PF: > { %s367_s30 = sld [smem:[#allocation3]]  ;;  %v368_v1 = vld [vmem:[%s1706_s22] sm:$0xff]  ;;  %v369_v2 = vld [vmem:[%s1706_s22 + $0x8] sm:$0xff]  ;;  %v370_v3 = vld [vmem:[%s1706_s22 + $0x10] sm:$0xff]  ;;  %p836_p8 = scmp.ne.s32.totalorder %s1346_s25, 1 }
  0xa0   : > { %v371_v4 = vld [vmem:[%s1706_s22 + $0x18] sm:$0xff]  ;;  %v351_v5 = vld [vmem:[%s1697_s10] sm:$0xff]  ;;  %v352_v6 = vld [vmem:[%s1697_s10 + $0x8] sm:$0xff] }
  0xa1   : > { %v353_v8 = vld [vmem:[%s1697_s10 + $0x10] sm:$0xff]  ;;  %v354_v9 = vld [vmem:[%s1697_s10 + $0x18] sm:$0xff]  ;;  %v372_v14 = vld [vmem:[%s1706_s22 + $0x20] sm:$0xff] }
  0xa2   : > { %v373_v15 = vld [vmem:[%s1706_s22 + $0x28] sm:$0xff]  ;;  %v417_v20 = vld [vmem:[%s1689_s12] sm:$0xff]  ;;  %v374_v30 = vld [vmem:[%s1706_s22 + $0x30] sm:$0xff] }
  0xa3   : > { %907 = vmatprep.mubr.f32.mxu0 %v417_v20  ;;  %v425_v25 = vld [vmem:[%s1689_s12 + $0x40] sm:$0xff]  ;;  %v356_v27 = vld [vmem:[%s1697_s10 + $0x28] sm:$0xff]  ;;  %v375_v31 = vld [vmem:[%s1706_s22 + $0x38] sm:$0xff] }
  0xa4   : > { %v355_v26 = vld [vmem:[%s1697_s10 + $0x20] sm:$0xff]  ;;  %919 = vmatprep.mubr.f32.mxu1 %v425_v25  ;;  %v357_v35 = vld [vmem:[%s1697_s10 + $0x30] sm:$0xff]  ;;  %v358_v36 = vld [vmem:[%s1697_s10 + $0x38] sm:$0xff] }
  0xa5   : > { %v1717_v7 = vstv %s367_s30  ;;  %v376_v39 = vld [vmem:[%s1706_s22 + $0x40] sm:$0xff]  ;;  %v377_v40 = vld [vmem:[%s1706_s22 + $0x48] sm:$0xff]  ;;  %v378_v48 = vld [vmem:[%s1706_s22 + $0x50] sm:$0xff] }
  0xa6   : > { %v385_v10 = vmul.f32 %v1717_v7, %v368_v1  ;;  %v386_v11 = vmul.f32 %v1717_v7, %v369_v2  ;;  %v387_v12 = vmul.f32 %v1717_v7, %v370_v3  ;;  %v388_v13 = vmul.f32 %v1717_v7, %v371_v4  ;;  %v359_v44 = vld [vmem:[%s1697_s10 + $0x40] sm:$0xff]  ;;  %v360_v45 = vld [vmem:[%s1697_s10 + $0x48] sm:$0xff]  ;;  %v379_v49 = vld [vmem:[%s1706_s22 + $0x58] sm:$0xff] }
  0xa7   : > { %v389_v23 = vmul.f32 %v1717_v7, %v372_v14  ;;  %v390_v24 = vmul.f32 %v1717_v7, %v373_v15  ;;  %v391_v33 = vmul.f32 %v1717_v7, %v374_v30  ;;  %v392_v34 = vmul.f32 %v1717_v7, %v375_v31  ;;  %v361_v53 = vld [vmem:[%s1697_s10 + $0x50] sm:$0xff]  ;;  %v362_v54 = vld [vmem:[%s1697_s10 + $0x58] sm:$0xff]  ;;  %v380_v57 = vld [vmem:[%s1706_s22 + $0x60] sm:$0xff] }
  0xa8   : > { %v401_v16 = vadd.f32 %v385_v10, %v351_v5  ;;  %v402_v17 = vadd.f32 %v386_v11, %v352_v6  ;;  %v403_v18 = vadd.f32 %v387_v12, %v353_v8  ;;  %v404_v19 = vadd.f32 %v388_v13, %v354_v9  ;;  %v381_v58 = vld [vmem:[%s1706_s22 + $0x68] sm:$0xff]  ;;  %v363_v62 = vld [vmem:[%s1697_s10 + $0x60] sm:$0xff]  ;;  %v382_v2 = vld [vmem:[%s1706_s22 + $0x70] sm:$0xff] }
  0xa9   : > { %v405_v28 = vadd.f32 %v389_v23, %v355_v26  ;;  %v406_v29 = vadd.f32 %v390_v24, %v356_v27  ;;  %v407_v37 = vadd.f32 %v391_v33, %v357_v35  ;;  %v408_v38 = vadd.f32 %v392_v34, %v358_v36  ;;  %v364_v63 = vld [vmem:[%s1697_s10 + $0x68] sm:$0xff]  ;;  %v383_v3 = vld [vmem:[%s1706_s22 + $0x78] sm:$0xff]  ;;  %v365_v8 = vld [vmem:[%s1697_s10 + $0x70] sm:$0xff] }
  0xaa   : > { %v931_v21 = vpack.c.bf16 %v402_v17, %v401_v16  ;;  %v935_v22 = vpack.c.bf16 %v404_v19, %v403_v18  ;;  %v393_v42 = vmul.f32 %v1717_v7, %v376_v39  ;;  %v394_v43 = vmul.f32 %v1717_v7, %v377_v40  ;;  %v366_v9 = vld [vmem:[%s1697_s10 + $0x78] sm:$0xff]  ;;  %v426_v13 = vld [vmem:[%s1689_s12 + $0x48] sm:$0xff]  ;;  %v419_v14 = vld [vmem:[%s1689_s12 + $0x10] sm:$0xff] }
  0xab   : > { %v939_v32 = vpack.c.bf16 %v406_v29, %v405_v28  ;;  %v943_v41 = vpack.c.bf16 %v408_v38, %v407_v37  ;;  %v395_v51 = vmul.f32 %v1717_v7, %v378_v48  ;;  %v396_v52 = vmul.f32 %v1717_v7, %v379_v49  ;;  %v427_v15 = vld [vmem:[%s1689_s12 + $0x50] sm:$0xff]  ;;  %v420_v16 = vld [vmem:[%s1689_s12 + $0x18] sm:$0xff]  ;;  %v421_v18 = vld [vmem:[%s1689_s12 + $0x20] sm:$0xff] }
  0xac   : > { %932 = vmatprep.subr.bf16.mxu0 %v931_v21  ;;  %963 = vmatprep.subr.bf16.mxu1 %v931_v21  ;;  %v409_v46 = vadd.f32 %v393_v42, %v359_v44  ;;  %v410_v47 = vadd.f32 %v394_v43, %v360_v45  ;;  %v397_v60 = vmul.f32 %v1717_v7, %v380_v57  ;;  %v428_v17 = vld [vmem:[%s1689_s12 + $0x58] sm:$0xff]  ;;  %v429_v19 = vld [vmem:[%s1689_s12 + $0x60] sm:$0xff]  ;;  %v422_v20 = vld [vmem:[%s1689_s12 + $0x28] sm:$0xff] }
  0xad   : > { %934 = vmatpush3.bf16.xpose.msra.mxu0 %v931_v21  ;;  %971 = vmatpush3.bf16.xpose.msra.mxu1 %v931_v21  ;;  %v411_v55 = vadd.f32 %v395_v51, %v361_v53  ;;  %v412_v56 = vadd.f32 %v396_v52, %v362_v54  ;;  %v398_v61 = vmul.f32 %v1717_v7, %v381_v58  ;;  %v430_v21 = vld [vmem:[%s1689_s12 + $0x68] sm:$0xff]  ;;  %v431_v23 = vld [vmem:[%s1689_s12 + $0x70] sm:$0xff]  ;;  %v424_v24 = vld [vmem:[%s1689_s12 + $0x38] sm:$0xff] }
  0xae   : > { %936 = vmatprep.subr.bf16.mxu0 %v935_v22  ;;  %964 = vmatprep.subr.bf16.mxu1 %v935_v22  ;;  %v947_v50 = vpack.c.bf16 %v410_v47, %v409_v46  ;;  %v413_v0 = vadd.f32 %v397_v60, %v363_v62  ;;  %v399_v5 = vmul.f32 %v1717_v7, %v382_v2  ;;  %v432_v25 = vld [vmem:[%s1689_s12 + $0x78] sm:$0xff]  ;;  %v579_v26 = vld [vmem:[#allocation2 + $0x8] sm:$0xff]  ;;  %v578_v28 = vld [vmem:[#allocation2] sm:$0xff] }
  0xaf   : > { %v951_v59 = vpack.c.bf16 %v412_v56, %v411_v55  ;;  %v414_v1 = vadd.f32 %v398_v61, %v364_v63  ;;  %v400_v6 = vmul.f32 %v1717_v7, %v383_v3  ;;  %v418_v7 = vld [vmem:[%s1689_s12 + $0x8] sm:$0xff]  ;;  %v586_v29 = vld [vmem:[#allocation2 + $0x40] sm:$0xff]  ;;  %v581_v38 = vld [vmem:[#allocation2 + $0x18] sm:$0xff] }
  0xb0   : > { %v415_v10 = vadd.f32 %v399_v5, %v365_v8  ;;  %v587_v27 = vld [vmem:[#allocation2 + $0x48] sm:$0xff]  ;;  %v589_v39 = vld [vmem:[#allocation2 + $0x58] sm:$0xff]  ;;  %v580_v40 = vld [vmem:[#allocation2 + $0x10] sm:$0xff] }
  0xb1   : > { %v955_v4 = vpack.c.bf16 %v414_v1, %v413_v0  ;;  %v416_v11 = vadd.f32 %v400_v6, %v366_v9  ;;  %v591_v51 = vld [vmem:[#allocation2 + $0x68] sm:$0xff]  ;;  %v582_v52 = vld [vmem:[#allocation2 + $0x20] sm:$0xff]  ;;  %v585_v62 = vld [vmem:[#allocation2 + $0x38] sm:$0xff] }
  0xb2   : > { %v590_v53 = vld [vmem:[#allocation2 + $0x60] sm:$0xff]  ;;  %v593_v63 = vld [vmem:[#allocation2 + $0x78] sm:$0xff]  ;;  %v584_v0 = vld [vmem:[#allocation2 + $0x30] sm:$0xff] }
  0xb3   : > { %v959_v12 = vpack.c.bf16 %v416_v11, %v415_v10  ;;  %v592_v1 = vld [vmem:[#allocation2 + $0x70] sm:$0xff] }
  0xb5   : > { %938 = vmatpush3.bf16.xpose.msra.mxu0 %v935_v22  ;;  %972 = vmatpush3.bf16.xpose.msra.mxu1 %v935_v22  ;;  %v423_v22 = vld [vmem:[%s1689_s12 + $0x30] sm:$0xff] }
  0xb6   : > { %940 = vmatprep.subr.bf16.mxu0 %v939_v32  ;;  %965 = vmatprep.subr.bf16.mxu1 %v939_v32 }
  0xbd   : > { %942 = vmatpush3.bf16.xpose.msra.mxu0 %v939_v32  ;;  %973 = vmatpush3.bf16.xpose.msra.mxu1 %v939_v32 }
  0xbe   : > { %944 = vmatprep.subr.bf16.mxu0 %v943_v41  ;;  %966 = vmatprep.subr.bf16.mxu1 %v943_v41 }
  0xc5   : > { %946 = vmatpush3.bf16.xpose.msra.mxu0 %v943_v41  ;;  %974 = vmatpush3.bf16.xpose.msra.mxu1 %v943_v41  ;;  %v588_v41 = vld [vmem:[#allocation2 + $0x50] sm:$0xff] }
  0xc6   : > { %948 = vmatprep.subr.bf16.mxu0 %v947_v50  ;;  %967 = vmatprep.subr.bf16.mxu1 %v947_v50 }
  0xcd   : > { %950 = vmatpush3.bf16.xpose.msra.mxu0 %v947_v50  ;;  %975 = vmatpush3.bf16.xpose.msra.mxu1 %v947_v50  ;;  %v583_v50 = vld [vmem:[#allocation2 + $0x28] sm:$0xff] }
  0xce   : > { %952 = vmatprep.subr.bf16.mxu0 %v951_v59  ;;  %968 = vmatprep.subr.bf16.mxu1 %v951_v59 }
  0xd5   : > { %954 = vmatpush3.bf16.xpose.msra.mxu0 %v951_v59  ;;  %976 = vmatpush3.bf16.xpose.msra.mxu1 %v951_v59 }
  0xd6   : > { %956 = vmatprep.subr.bf16.mxu0 %v955_v4  ;;  %969 = vmatprep.subr.bf16.mxu1 %v955_v4 }
  0xdd   : > { %958 = vmatpush3.bf16.xpose.msra.mxu0 %v955_v4  ;;  %977 = vmatpush3.bf16.xpose.msra.mxu1 %v955_v4 }
  0xde   : > { %960 = vmatprep.subr.bf16.mxu0 %v959_v12  ;;  %970 = vmatprep.subr.bf16.mxu1 %v959_v12 }
  0xe5   : > { %962 = vmatpush3.bf16.xpose.msra.mxu0 %v959_v12  ;;  %978 = vmatpush3.bf16.xpose.msra.mxu1 %v959_v12 }
  0xec   : > { %908 = vmatmul.mubr.f32.vlgmr.msra.gmra.mrb[0].mxu0 %v418_v7  ;;  %920 = vmatmul.mubr.f32.vlgmr.msra.gmra.mrb[0].mxu1 %v426_v13 }
  0xed   : > { %910 = vmatprep.mubr.f32.mxu0 %v419_v14  ;;  %922 = vmatprep.mubr.f32.mxu1 %v427_v15 }
  0xf0   : > { %911 = vmatmul.mubr.f32.gmra.mrb[2].mxu0 %v420_v16  ;;  %923 = vmatmul.mubr.f32.gmra.mrb[2].mxu1 %v428_v17 }
  0xf1   : > { %913 = vmatprep.mubr.f32.mxu0 %v421_v18  ;;  %925 = vmatprep.mubr.f32.mxu1 %v429_v19 }
  0xf4   : > { %914 = vmatmul.mubr.f32.gmra.mrb[4].mxu0 %v422_v20  ;;  %926 = vmatmul.mubr.f32.gmra.mrb[4].mxu1 %v430_v21 }
  0xf5   : > { %916 = vmatprep.mubr.f32.mxu0 %v423_v22  ;;  %928 = vmatprep.mubr.f32.mxu1 %v431_v23 }
  0xf8   : > { %917 = vmatmul.mubr.f32.gmra.mrb[6].mxu0 %v424_v24  ;;  %929 = vmatmul.mubr.f32.gmra.mrb[6].mxu1 %v432_v25 }
 0x1bf   : > { %v909_v30 = vpop.f32.mrb[0].mxu0  ;;  %v921_v31 = vpop.f32.mrb[0].mxu1 }
 0x1c0   : > { %v595_v32 = vadd.f32 %v909_v30, %v579_v26  ;;  %v603_v33 = vadd.f32 %v921_v31, %v587_v27  ;;  %v499_v34 = vpop.f32.mrb[1].mxu0  ;;  %v539_v35 = vpop.f32.mrb[1].mxu1 }
 0x1c1   : > { %v594_v36 = vadd.f32 %v578_v28, %v499_v34  ;;  %v602_v37 = vadd.f32 %v586_v29, %v539_v35 }
 0x1c2   : > { %611 = vst [vmem:[#allocation2 + $0x8] sm:$0xff] %v595_v32  ;;  %619 = vst [vmem:[#allocation2 + $0x48] sm:$0xff] %v603_v33 }
 0x1c3   : > { %610 = vst [vmem:[#allocation2] sm:$0xff] %v594_v36  ;;  %618 = vst [vmem:[#allocation2 + $0x40] sm:$0xff] %v602_v37  ;;  %v912_v42 = vpop.f32.mrb[2].mxu0  ;;  %v924_v43 = vpop.f32.mrb[2].mxu1 }
 0x1c4   : > { %v597_v44 = vadd.f32 %v912_v42, %v581_v38  ;;  %v605_v45 = vadd.f32 %v924_v43, %v589_v39  ;;  %v509_v46 = vpop.f32.mrb[3].mxu0  ;;  %v549_v47 = vpop.f32.mrb[3].mxu1 }
 0x1c5   : > { %v596_v48 = vadd.f32 %v580_v40, %v509_v46  ;;  %v604_v49 = vadd.f32 %v588_v41, %v549_v47 }
 0x1c6   : > { %613 = vst [vmem:[#allocation2 + $0x18] sm:$0xff] %v597_v44  ;;  %621 = vst [vmem:[#allocation2 + $0x58] sm:$0xff] %v605_v45 }
 0x1c7   : > { %612 = vst [vmem:[#allocation2 + $0x10] sm:$0xff] %v596_v48  ;;  %620 = vst [vmem:[#allocation2 + $0x50] sm:$0xff] %v604_v49  ;;  %v915_v54 = vpop.f32.mrb[4].mxu0  ;;  %v927_v55 = vpop.f32.mrb[4].mxu1 }
 0x1c8   : > { %v599_v56 = vadd.f32 %v915_v54, %v583_v50  ;;  %v607_v57 = vadd.f32 %v927_v55, %v591_v51  ;;  %v519_v58 = vpop.f32.mrb[5].mxu0  ;;  %v559_v59 = vpop.f32.mrb[5].mxu1 }
 0x1c9   : > { %v598_v60 = vadd.f32 %v582_v52, %v519_v58  ;;  %v606_v61 = vadd.f32 %v590_v53, %v559_v59  ;;  %629 = sbr.rel (%p836_p8) target bundleno = 473 (0x1d9), region = 56  ;;  %v631_v12 = vld [vmem:[#allocation2 + $0x8] sm:$0xff] (!%p836_p8) }
 0x1ca   : > { %615 = vst [vmem:[#allocation2 + $0x28] sm:$0xff] %v599_v56  ;;  %623 = vst [vmem:[#allocation2 + $0x68] sm:$0xff] %v607_v57  ;;  %v630_v11 = vld [vmem:[#allocation2] sm:$0xff] (!%p836_p8)  ;;  %v639_v19 = vld [vmem:[#allocation2 + $0x48] sm:$0xff] (!%p836_p8) }
 0x1cb   : > { %614 = vst [vmem:[#allocation2 + $0x20] sm:$0xff] %v598_v60  ;;  %622 = vst [vmem:[#allocation2 + $0x60] sm:$0xff] %v606_v61  ;;  %v918_v2 = vpop.f32.mrb[6].mxu0  ;;  %v930_v3 = vpop.f32.mrb[6].mxu1  ;;  %v638_v18 = vld [vmem:[#allocation2 + $0x40] sm:$0xff] (!%p836_p8) }
 0x1cc   : > { %v601_v4 = vadd.f32 %v918_v2, %v585_v62  ;;  %v609_v5 = vadd.f32 %v930_v3, %v593_v63  ;;  %v529_v6 = vpop.f32.mrb[7].mxu0  ;;  %v569_v8 = vpop.f32.mrb[7].mxu1  ;;  %646 = vst [vmem:[%s1708_s23] sm:$0xff] (!%p836_p8), %v630_v11  ;;  %647 = vst [vmem:[%s1708_s23 + $0x8] sm:$0xff] (!%p836_p8), %v631_v12 }
 0x1cd   : > { %v600_v9 = vadd.f32 %v584_v0, %v529_v6  ;;  %v608_v10 = vadd.f32 %v592_v1, %v569_v8  ;;  %v633_v13 = vld [vmem:[#allocation2 + $0x18] sm:$0xff] (!%p836_p8)  ;;  %654 = vst [vmem:[%s1708_s23 + $0x40] sm:$0xff] (!%p836_p8), %v638_v18  ;;  %655 = vst [vmem:[%s1708_s23 + $0x48] sm:$0xff] (!%p836_p8), %v639_v19 }
 0x1ce   : > { %617 = vst [vmem:[#allocation2 + $0x38] sm:$0xff] %v601_v4  ;;  %625 = vst [vmem:[#allocation2 + $0x78] sm:$0xff] %v609_v5  ;;  %v632_v7 = vld [vmem:[#allocation2 + $0x10] sm:$0xff] (!%p836_p8)  ;;  %v641_v21 = vld [vmem:[#allocation2 + $0x58] sm:$0xff] (!%p836_p8) }
 0x1cf   : > { %616 = vst [vmem:[#allocation2 + $0x30] sm:$0xff] %v600_v9  ;;  %624 = vst [vmem:[#allocation2 + $0x70] sm:$0xff] %v608_v10  ;;  %v640_v20 = vld [vmem:[#allocation2 + $0x50] sm:$0xff] (!%p836_p8) }
 0x1d0   : > { %648 = vst [vmem:[%s1708_s23 + $0x10] sm:$0xff] %v632_v7  ;;  %649 = vst [vmem:[%s1708_s23 + $0x18] sm:$0xff] %v633_v13 }
 0x1d1   : > { %v635_v15 = vld [vmem:[#allocation2 + $0x28] sm:$0xff]  ;;  %656 = vst [vmem:[%s1708_s23 + $0x50] sm:$0xff] %v640_v20  ;;  %657 = vst [vmem:[%s1708_s23 + $0x58] sm:$0xff] %v641_v21 }
 0x1d2   : > { %v634_v14 = vld [vmem:[#allocation2 + $0x20] sm:$0xff]  ;;  %651 = vst [vmem:[%s1708_s23 + $0x28] sm:$0xff] %v635_v15  ;;  %v643_v23 = vld [vmem:[#allocation2 + $0x68] sm:$0xff] }
 0x1d3   : > { %650 = vst [vmem:[%s1708_s23 + $0x20] sm:$0xff] %v634_v14  ;;  %v642_v22 = vld [vmem:[#allocation2 + $0x60] sm:$0xff]  ;;  %659 = vst [vmem:[%s1708_s23 + $0x68] sm:$0xff] %v643_v23 }
 0x1d4   : > { %658 = vst [vmem:[%s1708_s23 + $0x60] sm:$0xff] %v642_v22 }
 0x1d5   : > { %v637_v17 = vld [vmem:[#allocation2 + $0x38] sm:$0xff] }
 0x1d6   : > { %v636_v16 = vld [vmem:[#allocation2 + $0x30] sm:$0xff]  ;;  %653 = vst [vmem:[%s1708_s23 + $0x38] sm:$0xff] %v637_v17  ;;  %v645_v25 = vld [vmem:[#allocation2 + $0x78] sm:$0xff] }
 0x1d7   : > { %652 = vst [vmem:[%s1708_s23 + $0x30] sm:$0xff] %v636_v16  ;;  %v644_v24 = vld [vmem:[#allocation2 + $0x70] sm:$0xff]  ;;  %661 = vst [vmem:[%s1708_s23 + $0x78] sm:$0xff] %v645_v25 }
 0x1d8   : > { %660 = vst [vmem:[%s1708_s23 + $0x70] sm:$0xff] %v644_v24 }
 0x1d9 PF: > { %s1941_s25 = sld [smem:[#allocation16_spill]]  ;;  %s1942_s11 = sld [smem:[#allocation22_spill]] }
 0x1da   : > { %s1943_s28 = sld [smem:[#allocation25_spill]]  ;;  %s678_s13 = sshll.u32 %s1708_s23, 4  ;;  %s1801_s13 = int_to_ptr.vmem [resolvable:$true] %s678_s13 }
 0x1db   : > { %s1805_s6 = scalar_lea.sflag [#allocation6], %s324_s26  ;;  %s1212_s12 = scalar_lea.vmem %s1801_s13, 2048 }
 0x1dc   : > { %p1213_p9 = scmp.ne.s32.totalorder %s1801_s13, %s1212_s12  ;;  %s1371_s5 = smov [#allocation10]  }
 0x1dd   : > { %s1216_s4 = sshll.u32 %s1371_s5, 4  ;;  %s1217_s4 = int_to_ptr.vmem [resolvable:$false] %s1216_s4 }
 0x1de   : > { %s1218_s14 = scalar_lea.vmem %s1217_s4, 4096  ;;  %p1219_p7 = scmp.lt.s32.totalorder %s1801_s13, %s1217_s4 }
 0x1df   : > { %s838_s15 = sshll.u32 %s1941_s25, 7  ;;  %p1945_p1 = scmp.ne.s32.totalorder %s1942_s11, 0 }
 0x1e0   : > { %s1944_s1 = smov %s1943_s28  ;;  %s1798_s20 = scalar_lea.hbm %s1943_s28, %s838_s15 }
 0x1e1   : > { %p1214_p10 = pnand %p1213_p9, %p1945_p1  ;;  %p1220_p5 = scmp.lt.s32.totalorder %s1218_s14, %s1212_s12 }
 0x1e3   : > { %p1215_p13 = pneg %p1214_p10  ;;  %p1221_p3 = por %p1220_p5, %p1219_p7 }
 0x1e5   : > { %p1222_p4 = pnand %p1221_p3, %p1215_p13 }
 0x1e7   : > { %1225 = shalt.err (!%p1222_p4)
}
 0x1e8   : > { %s1226_s8 = scalar_lea.hbm %s1798_s20, 2048  ;;  %s1230_s19 = scalar_lea.hbm %s1944_s1, 4096 }
 0x1e9   : > { %p1227_p11 = scmp.ne.s32.totalorder %s1798_s20, %s1226_s8  ;;  %p1231_p6 = scmp.lt.u32.totalorder %s1798_s20, %s1944_s1 }
 0x1ea   : > { %p1232_p12 = scmp.lt.u32.totalorder %s1230_s19, %s1226_s8  ;;  %p1234_p9 = scmp.lt.u32.totalorder %s1226_s8, %s1798_s20 }
 0x1eb   : > { %p1228_p0 = pnand %p1227_p11, %p1945_p1 }
 0x1ec   : > { %p1233_p8 = por %p1232_p12, %p1231_p6 }
 0x1ed   : > { %p1229_p2 = pneg %p1228_p0 }
 0x1ee   : > { %p1235_p10 = por %p1234_p9, %p1233_p8 }
 0x1f0   : > { %p1236_p13 = pnand %p1235_p10, %p1229_p2 }
 0x1f2   : > { %1239 = shalt.err (!%p1236_p13)
}
 0x1f3   : > { %s1372_s30 = smov 128   ;;  %s1373_s25 = smov 256  }
 0x1f4   : > { %s1374_s15 = smov 8  }
 0x1f5   : > { %985 = dma.vmem_to_hbm [thread:$0]  (%p1945_p1), %s1801_s13, 2048, %s1798_s20, %s1805_s6, %s1372_s30, %s1373_s25, %s1374_s15  }
 0x1f6 PF: > { %s1946_s7 = sld [smem:[#allocation23_spill]]  ;;  %p1002_p7 = scmp.ge.s32.totalorder %s1362_s29, 2 }
 0x1f7   : > { %s693_s9 = sand.u32 1, %s1310_s17  }
 0x1f8   : > { %s694_s28 = scalar_lea.sflag [#allocation6], %s693_s9 }
 0x1fc   : > { %p1947_p5 = scmp.ne.s32.totalorder %s1946_s7, 0 }
 0x1fe   : > { %p998_p3 = pnand %p1002_p7, %p1947_p5 }
 0x200   : > { %1305 = dma.done.wait (!%p998_p3), %s694_s28, 2048  }
 0x201   : > { %1307 = vsyncadd (!%p998_p3), %s694_s28, 4294965248  ;;  %s24_s29 = sadd.s32 1, %s1362_s29   ;;  %s1949_s11 = sld [smem:[#allocation14_spill]] }
 0x202   : > { %p1834_p4 = scmp.ge.s32.totalorder %s24_s29, 6   ;;  %s1950_s19 = sld [smem:[#allocation20_spill]] }
 0x203   : > { %s1951_s13 = sld [smem:[#allocation15_spill]]  ;;  %s1952_s22 = sld [smem:[#allocation21_spill]] }
 0x204   : > { %s1953_s26 = sld [smem:[#allocation17_spill]]  ;;  %s1954_s6 = sld [smem:[#allocation18_spill]] }
 0x205   : > { %s1955_s28 = sld [smem:[#allocation19_spill]]  ;;  %s1956_s17 = smov %s1314_s18 }
 0x206   : > { %s1958_s20 = smov %s1326_s21  ;;  %s1960_s23 = smov %s1338_s0 }
 0x207   : > { %s1957_s18 = smov %s1949_s11  ;;  %s1961_s0 = smov %s1342_s24 }
 0x208   : > { %s1962_s24 = smov %s1596_s16  ;;  %s1963_s25 = smov %s1354_s27 }
 0x209   : > { %s1959_s21 = smov %s1951_s13  ;;  %23 = sbr.rel (!%p1834_p4) target bundleno = 16 (0x10), region = 113 }
 0x20a   : > { %s1964_s27 = smov %s1954_s6 }
 0x210   :  { %699 = vsyncpa [#allocation5], 1 }
 0x211   :  { %701 = vsyncpa [#allocation5 + $0x1], 1 }
 0x212   :  { %702 = vsyncpa [#allocation8], 1 }
 0x213   :  { %704 = vsyncpa [#allocation8 + $0x1], 1 }
 0x214   :  { %705 = vsyncpa [#allocation6], 1 }
 0x215   :  { %707 = vsyncpa [#allocation6 + $0x1], 1 }

</bundles_post_ra>
